<compile_context>
chip_gen: v5e
topology: v5e:2x2
jax: 0.10.0
libtpu: 0.0.40
codegen_flags: <defaults>
</compile_context>

<pallas_src>
import functools

import jax
import jax.numpy as jnp
from jax import lax
from jax.experimental import pallas as pl
from jax.experimental.pallas import tpu as pltpu


def _norm_conv_kernel(x_ref, wtap_ref, amp_ref, w1_ref, o_ref, *, k, W, C, N, Co):
    # x_ref   : (C*N, Lp)   VMEM  input slab, row = c*N + n, lane = i*W + j
    # wtap_ref: (C*N, k*k)  VMEM  per-row L2-normalized depthwise taps
    # amp_ref : (C*N, 1)    VMEM  per-row merge_amp weights
    # w1_ref  : (Co, C)     SMEM  1x1 "stretch" conv weights
    # o_ref   : (Co*N, Lp)  VMEM  output slab, row = co*N + n (cropped in wrapper)
    L = x_ref.shape[-1]

    x = x_ref[...].astype(jnp.float32)
    wtap = wtap_ref[...]
    amp = amp_ref[...]

    def shl(v, s):
        # Left shift by s along lanes (XLU roll); the wrap tail only lands in
        # flat positions that the wrapper crops away.
        if s == 0:
            return v
        return pltpu.roll(v, L - s, axis=1)

    # Shared lane-shifted taps dj = 0..k-1 (reused by both conv paths).
    xs = [shl(x, dj) for dj in range(k)]

    # --- depthwise ("group") conv: per-row weight columns broadcast over
    # lanes; combine the k lane taps per kernel row, then fold the k row
    # offsets with lane rolls of di*W.
    acc_group = None
    for di in range(k):
        row = xs[0] * wtap[:, di * k:di * k + 1]
        for dj in range(1, k):
            row = row + xs[dj] * wtap[:, di * k + dj:di * k + dj + 1]
        row = shl(row, di * W)
        acc_group = row if acc_group is None else acc_group + row

    # --- norm_conv (all-ones weights) on x^2: separable box filter.
    # Square the already-shifted taps instead of shifting a squared copy.
    s1 = xs[0] * xs[0]
    for dj in range(1, k):
        s1 = s1 + xs[dj] * xs[dj]
    acc_sq = None
    for di in range(k):
        t = shl(s1, di * W)
        acc_sq = t if acc_sq is None else acc_sq + t

    # x_norm = sqrt(s); x_out = amp*x_norm + x_group/x_norm = rsqrt(s)*(amp*s + x_group)
    s = acc_sq + 1e-8
    rs = lax.rsqrt(s)                                # EUP; no VALU divide
    x_out = rs * (amp * s + acc_group)               # (C*N, L)

    # --- 1x1 "stretch" conv (no bias) on the VPU: Co x C scaled adds of
    # (N, L) row groups; every store is full lane width (unmasked lanes).
    chans = [x_out[c * N:(c + 1) * N, :] for c in range(C)]      # C x (N, L)
    for co in range(Co):
        acc = chans[0] * w1_ref[co, 0]
        for c in range(1, C):
            acc = acc + chans[c] * w1_ref[co, c]
        o_ref[co * N:(co + 1) * N, :] = acc.astype(o_ref.dtype)


def norm_conv2d(x_nchw, group_weight, merge_amp_weight, out1x1_weight, kernel_size):
    """x_nchw: (N,C,H,W); group_weight: (C,1,k,k); merge_amp_weight: (C,);
    out1x1_weight: (Co,C,1,1)."""
    N, C, H, W = x_nchw.shape
    k = kernel_size
    Ho, Wo = H - k + 1, W - k + 1
    Co = out1x1_weight.shape[0]
    HW = H * W
    Lp = ((HW + 127) // 128) * 128        # lane-dense: pad flat spatial to 128x

    # --- glue: per-channel L2 normalization of the depthwise weight, in f32
    # (matches forward(), which renormalizes whenever norms drift from 1).
    gw = group_weight.astype(jnp.float32)
    norms = jnp.sqrt(jnp.sum(gw * gw, axis=(1, 2, 3), keepdims=True))
    wdw = (gw / norms).reshape(C, k * k)                          # (C, k*k)

    # Channel-major slab: row index = c*N + n, flat spatial on lanes.
    x2d = jnp.transpose(x_nchw, (1, 0, 2, 3)).reshape(C * N, HW).astype(jnp.float32)
    if Lp != HW:
        x2d = jnp.pad(x2d, ((0, 0), (0, Lp - HW)))

    # Per-row weight tables (so the kernel multiplies by (rows,1) columns
    # instead of splatting SMEM scalars inside the tap loops).
    wtap = jnp.repeat(wdw, N, axis=0)                             # (C*N, k*k)
    ampcol = jnp.repeat(merge_amp_weight.astype(jnp.float32), N)[:, None]  # (C*N,1)
    w1 = out1x1_weight[:, :, 0, 0].astype(jnp.float32)            # (Co, C)

    kernel = functools.partial(_norm_conv_kernel, k=k, W=W, C=C, N=N, Co=Co)

    flops = int(2 * N * Ho * Wo * (C * (k * k + 2 * k + 4) + Co * C))
    bytes_accessed = int(4 * (x2d.size + Co * N * Lp
                              + wtap.size + ampcol.size + w1.size))

    out2d = pl.pallas_call(
        kernel,
        out_shape=jax.ShapeDtypeStruct((Co * N, Lp), jnp.float32),
        in_specs=[
            pl.BlockSpec(memory_space=pltpu.MemorySpace.VMEM),   # x slab
            pl.BlockSpec(memory_space=pltpu.MemorySpace.VMEM),   # wtap columns
            pl.BlockSpec(memory_space=pltpu.MemorySpace.VMEM),   # amp column
            pl.BlockSpec(memory_space=pltpu.MemorySpace.SMEM),   # w1 scalars
        ],
        out_specs=pl.BlockSpec(memory_space=pltpu.MemorySpace.VMEM),
        cost_estimate=pl.CostEstimate(
            flops=flops,
            transcendentals=int(N * C * Ho * Wo),
            bytes_accessed=bytes_accessed,
        ),
    )(x2d, wtap, ampcol, w1)

    # Layout plumbing + single crop of the invalid (wrapped) flat positions.
    out = out2d[:, :HW].reshape(Co, N, H, W).transpose(1, 0, 2, 3)[:, :, :Ho, :Wo]
    return out.astype(x_nchw.dtype)


def _reference(x, group_weight, merge_amp_weight, out1x1_weight, k):
    """Pure-JAX reference mirroring the PyTorch forward (NCHW, defaults)."""
    N, C, H, W = x.shape
    gw = group_weight.astype(jnp.float32)
    norms = jnp.sqrt(jnp.sum(gw ** 2, axis=(1, 2, 3), keepdims=True))
    wgn = gw / norms
    x_group = lax.conv_general_dilated(
        x, wgn, (1, 1), 'VALID',
        dimension_numbers=('NCHW', 'OIHW', 'NCHW'), feature_group_count=C)
    ones = jnp.ones((C, 1, k, k), x.dtype)
    x_square = lax.conv_general_dilated(
        x * x, ones, (1, 1), 'VALID',
        dimension_numbers=('NCHW', 'OIHW', 'NCHW'), feature_group_count=C) + 1e-8
    x_norm = jnp.sqrt(x_square)
    x_normalized = x_group / x_norm
    x_out = x_norm * merge_amp_weight[None, :, None, None] + x_normalized
    return lax.conv_general_dilated(
        x_out, out1x1_weight, (1, 1), 'VALID',
        dimension_numbers=('NCHW', 'OIHW', 'NCHW'))


if __name__ == "__main__":
    # Small shapes consistent with the module.
    N, C, H, W = 2, 4, 16, 16
    Co = 8
    k = 3

    key = jax.random.PRNGKey(0)
    k_x, k_g, k_s = jax.random.split(key, 3)

    x = jax.random.normal(k_x, (N, C, H, W), jnp.float32)
    # Deterministic "kaiming-normal-like" init (synthetic; no checkpoint load).
    group_weight = jax.random.normal(k_g, (C, 1, k, k), jnp.float32) * \
        jnp.sqrt(2.0 / (k * k))
    out1x1_weight = jax.random.normal(k_s, (Co, C, 1, 1), jnp.float32) * \
        jnp.sqrt(2.0 / C)
    merge_amp_weight = jnp.ones((C,), jnp.float32)   # _init_weight fills with 1

    out = norm_conv2d(x, group_weight, merge_amp_weight, out1x1_weight, k)
    out = jax.block_until_ready(out)

    ref = _reference(x, group_weight, merge_amp_weight, out1x1_weight, k)
    assert out.shape == (N, Co, H - k + 1, W - k + 1)
    err = jnp.max(jnp.abs(out - ref))
    assert jnp.allclose(out, ref, atol=2e-4, rtol=2e-4), f"max err {err}"

    print("KERNEL_OK")
</pallas_src>

<mosaic_0001>
module attributes {stable_mosaic.version = 11 : i64} {
  func.func @_norm_conv_kernel(%arg0: memref<8x256xf32, #tpu.memory_space<vmem>>, %arg1: memref<8x9xf32, #tpu.memory_space<vmem>>, %arg2: memref<8x1xf32, #tpu.memory_space<vmem>>, %arg3: memref<8x4xf32, #tpu.memory_space<smem>>, %arg4: memref<16x256xf32, #tpu.memory_space<vmem>>) attributes {dimension_semantics = [], scalar_prefetch = 0 : i64, scratch_operands = 0 : i64, tpu.core_type = #tpu.core_type<tc>} {
    %c0 = arith.constant 0 : index
    %c0_0 = arith.constant 0 : index
    %0 = vector.load %arg0[%c0, %c0_0] : memref<8x256xf32, #tpu.memory_space<vmem>>, vector<8x256xf32>
    %c0_1 = arith.constant 0 : index
    %c0_2 = arith.constant 0 : index
    %1 = vector.load %arg1[%c0_1, %c0_2] : memref<8x9xf32, #tpu.memory_space<vmem>>, vector<8x9xf32>
    %c0_3 = arith.constant 0 : index
    %c0_4 = arith.constant 0 : index
    %2 = vector.load %arg2[%c0_3, %c0_4] : memref<8x1xf32, #tpu.memory_space<vmem>>, vector<8x1xf32>
    %c255_i32 = arith.constant 255 : i32
    %3 = tpu.dynamic_rotate %0 by %c255_i32 dim 1 : vector<8x256xf32>, i32 -> vector<8x256xf32>
    %c254_i32 = arith.constant 254 : i32
    %4 = tpu.dynamic_rotate %0 by %c254_i32 dim 1 : vector<8x256xf32>, i32 -> vector<8x256xf32>
    %5 = vector.extract_strided_slice %1 {offsets = [0, 0], sizes = [8, 1], strides = [1, 1]} : vector<8x9xf32> to vector<8x1xf32>
    %6 = vector.broadcast %5 : vector<8x1xf32> to vector<8x256xf32>
    %7 = arith.mulf %0, %6 : vector<8x256xf32>
    %8 = vector.extract_strided_slice %1 {offsets = [0, 1], sizes = [8, 1], strides = [1, 1]} : vector<8x9xf32> to vector<8x1xf32>
    %9 = vector.broadcast %8 : vector<8x1xf32> to vector<8x256xf32>
    %10 = arith.mulf %3, %9 : vector<8x256xf32>
    %11 = arith.addf %7, %10 : vector<8x256xf32>
    %12 = vector.extract_strided_slice %1 {offsets = [0, 2], sizes = [8, 1], strides = [1, 1]} : vector<8x9xf32> to vector<8x1xf32>
    %13 = vector.broadcast %12 : vector<8x1xf32> to vector<8x256xf32>
    %14 = arith.mulf %4, %13 : vector<8x256xf32>
    %15 = arith.addf %11, %14 : vector<8x256xf32>
    %16 = vector.extract_strided_slice %1 {offsets = [0, 3], sizes = [8, 1], strides = [1, 1]} : vector<8x9xf32> to vector<8x1xf32>
    %17 = vector.broadcast %16 : vector<8x1xf32> to vector<8x256xf32>
    %18 = arith.mulf %0, %17 : vector<8x256xf32>
    %19 = vector.extract_strided_slice %1 {offsets = [0, 4], sizes = [8, 1], strides = [1, 1]} : vector<8x9xf32> to vector<8x1xf32>
    %20 = vector.broadcast %19 : vector<8x1xf32> to vector<8x256xf32>
    %21 = arith.mulf %3, %20 : vector<8x256xf32>
    %22 = arith.addf %18, %21 : vector<8x256xf32>
    %23 = vector.extract_strided_slice %1 {offsets = [0, 5], sizes = [8, 1], strides = [1, 1]} : vector<8x9xf32> to vector<8x1xf32>
    %24 = vector.broadcast %23 : vector<8x1xf32> to vector<8x256xf32>
    %25 = arith.mulf %4, %24 : vector<8x256xf32>
    %26 = arith.addf %22, %25 : vector<8x256xf32>
    %c240_i32 = arith.constant 240 : i32
    %27 = tpu.dynamic_rotate %26 by %c240_i32 dim 1 : vector<8x256xf32>, i32 -> vector<8x256xf32>
    %28 = arith.addf %15, %27 : vector<8x256xf32>
    %29 = vector.extract_strided_slice %1 {offsets = [0, 6], sizes = [8, 1], strides = [1, 1]} : vector<8x9xf32> to vector<8x1xf32>
    %30 = vector.broadcast %29 : vector<8x1xf32> to vector<8x256xf32>
    %31 = arith.mulf %0, %30 : vector<8x256xf32>
    %32 = vector.extract_strided_slice %1 {offsets = [0, 7], sizes = [8, 1], strides = [1, 1]} : vector<8x9xf32> to vector<8x1xf32>
    %33 = vector.broadcast %32 : vector<8x1xf32> to vector<8x256xf32>
    %34 = arith.mulf %3, %33 : vector<8x256xf32>
    %35 = arith.addf %31, %34 : vector<8x256xf32>
    %36 = vector.extract_strided_slice %1 {offsets = [0, 8], sizes = [8, 1], strides = [1, 1]} : vector<8x9xf32> to vector<8x1xf32>
    %37 = vector.broadcast %36 : vector<8x1xf32> to vector<8x256xf32>
    %38 = arith.mulf %4, %37 : vector<8x256xf32>
    %39 = arith.addf %35, %38 : vector<8x256xf32>
    %c224_i32 = arith.constant 224 : i32
    %40 = tpu.dynamic_rotate %39 by %c224_i32 dim 1 : vector<8x256xf32>, i32 -> vector<8x256xf32>
    %41 = arith.addf %28, %40 : vector<8x256xf32>
    %42 = arith.mulf %0, %0 : vector<8x256xf32>
    %43 = arith.mulf %3, %3 : vector<8x256xf32>
    %44 = arith.addf %42, %43 : vector<8x256xf32>
    %45 = arith.mulf %4, %4 : vector<8x256xf32>
    %46 = arith.addf %44, %45 : vector<8x256xf32>
    %c240_i32_5 = arith.constant 240 : i32
    %47 = tpu.dynamic_rotate %46 by %c240_i32_5 dim 1 : vector<8x256xf32>, i32 -> vector<8x256xf32>
    %48 = arith.addf %46, %47 : vector<8x256xf32>
    %c224_i32_6 = arith.constant 224 : i32
    %49 = tpu.dynamic_rotate %46 by %c224_i32_6 dim 1 : vector<8x256xf32>, i32 -> vector<8x256xf32>
    %50 = arith.addf %48, %49 : vector<8x256xf32>
    %cst = arith.constant 9.99999993E-9 : f32
    %51 = vector.broadcast %cst : f32 to vector<8x256xf32>
    %52 = arith.addf %50, %51 : vector<8x256xf32>
    %53 = math.rsqrt %52 : vector<8x256xf32>
    %54 = vector.broadcast %2 : vector<8x1xf32> to vector<8x256xf32>
    %55 = arith.mulf %54, %52 : vector<8x256xf32>
    %56 = arith.addf %55, %41 : vector<8x256xf32>
    %57 = arith.mulf %53, %56 : vector<8x256xf32>
    %58 = vector.extract_strided_slice %57 {offsets = [0, 0], sizes = [2, 256], strides = [1, 1]} : vector<8x256xf32> to vector<2x256xf32>
    %59 = vector.extract_strided_slice %57 {offsets = [2, 0], sizes = [2, 256], strides = [1, 1]} : vector<8x256xf32> to vector<2x256xf32>
    %60 = vector.extract_strided_slice %57 {offsets = [4, 0], sizes = [2, 256], strides = [1, 1]} : vector<8x256xf32> to vector<2x256xf32>
    %61 = vector.extract_strided_slice %57 {offsets = [6, 0], sizes = [2, 256], strides = [1, 1]} : vector<8x256xf32> to vector<2x256xf32>
    %c0_7 = arith.constant 0 : index
    %c0_8 = arith.constant 0 : index
    %62 = memref.load %arg3[%c0_7, %c0_8] : memref<8x4xf32, #tpu.memory_space<smem>>
    %63 = vector.broadcast %62 : f32 to vector<2x256xf32>
    %64 = arith.mulf %58, %63 : vector<2x256xf32>
    %c0_9 = arith.constant 0 : index
    %c1 = arith.constant 1 : index
    %65 = memref.load %arg3[%c0_9, %c1] : memref<8x4xf32, #tpu.memory_space<smem>>
    %66 = vector.broadcast %65 : f32 to vector<2x256xf32>
    %67 = arith.mulf %59, %66 : vector<2x256xf32>
    %68 = arith.addf %64, %67 : vector<2x256xf32>
    %c0_10 = arith.constant 0 : index
    %c2 = arith.constant 2 : index
    %69 = memref.load %arg3[%c0_10, %c2] : memref<8x4xf32, #tpu.memory_space<smem>>
    %70 = vector.broadcast %69 : f32 to vector<2x256xf32>
    %71 = arith.mulf %60, %70 : vector<2x256xf32>
    %72 = arith.addf %68, %71 : vector<2x256xf32>
    %c0_11 = arith.constant 0 : index
    %c3 = arith.constant 3 : index
    %73 = memref.load %arg3[%c0_11, %c3] : memref<8x4xf32, #tpu.memory_space<smem>>
    %74 = vector.broadcast %73 : f32 to vector<2x256xf32>
    %75 = arith.mulf %61, %74 : vector<2x256xf32>
    %76 = arith.addf %72, %75 : vector<2x256xf32>
    %c0_12 = arith.constant 0 : index
    %c0_13 = arith.constant 0 : index
    %77 = vector.load %arg4[%c0_12, %c0_13] : memref<16x256xf32, #tpu.memory_space<vmem>>, vector<2x256xf32>
    tpu.vector_store %arg4[%c0_12, %c0_13], %76 {strides = array<i32>} : memref<16x256xf32, #tpu.memory_space<vmem>>, vector<2x256xf32>,
    %c1_14 = arith.constant 1 : index
    %c0_15 = arith.constant 0 : index
    %78 = memref.load %arg3[%c1_14, %c0_15] : memref<8x4xf32, #tpu.memory_space<smem>>
    %79 = vector.broadcast %78 : f32 to vector<2x256xf32>
    %80 = arith.mulf %58, %79 : vector<2x256xf32>
    %c1_16 = arith.constant 1 : index
    %c1_17 = arith.constant 1 : index
    %81 = memref.load %arg3[%c1_16, %c1_17] : memref<8x4xf32, #tpu.memory_space<smem>>
    %82 = vector.broadcast %81 : f32 to vector<2x256xf32>
    %83 = arith.mulf %59, %82 : vector<2x256xf32>
    %84 = arith.addf %80, %83 : vector<2x256xf32>
    %c1_18 = arith.constant 1 : index
    %c2_19 = arith.constant 2 : index
    %85 = memref.load %arg3[%c1_18, %c2_19] : memref<8x4xf32, #tpu.memory_space<smem>>
    %86 = vector.broadcast %85 : f32 to vector<2x256xf32>
    %87 = arith.mulf %60, %86 : vector<2x256xf32>
    %88 = arith.addf %84, %87 : vector<2x256xf32>
    %c1_20 = arith.constant 1 : index
    %c3_21 = arith.constant 3 : index
    %89 = memref.load %arg3[%c1_20, %c3_21] : memref<8x4xf32, #tpu.memory_space<smem>>
    %90 = vector.broadcast %89 : f32 to vector<2x256xf32>
    %91 = arith.mulf %61, %90 : vector<2x256xf32>
    %92 = arith.addf %88, %91 : vector<2x256xf32>
    %c2_22 = arith.constant 2 : index
    %c0_23 = arith.constant 0 : index
    %93 = vector.load %arg4[%c2_22, %c0_23] : memref<16x256xf32, #tpu.memory_space<vmem>>, vector<2x256xf32>
    tpu.vector_store %arg4[%c2_22, %c0_23], %92 {strides = array<i32>} : memref<16x256xf32, #tpu.memory_space<vmem>>, vector<2x256xf32>,
    %c2_24 = arith.constant 2 : index
    %c0_25 = arith.constant 0 : index
    %94 = memref.load %arg3[%c2_24, %c0_25] : memref<8x4xf32, #tpu.memory_space<smem>>
    %95 = vector.broadcast %94 : f32 to vector<2x256xf32>
    %96 = arith.mulf %58, %95 : vector<2x256xf32>
    %c2_26 = arith.constant 2 : index
    %c1_27 = arith.constant 1 : index
    %97 = memref.load %arg3[%c2_26, %c1_27] : memref<8x4xf32, #tpu.memory_space<smem>>
    %98 = vector.broadcast %97 : f32 to vector<2x256xf32>
    %99 = arith.mulf %59, %98 : vector<2x256xf32>
    %100 = arith.addf %96, %99 : vector<2x256xf32>
    %c2_28 = arith.constant 2 : index
    %c2_29 = arith.constant 2 : index
    %101 = memref.load %arg3[%c2_28, %c2_29] : memref<8x4xf32, #tpu.memory_space<smem>>
    %102 = vector.broadcast %101 : f32 to vector<2x256xf32>
    %103 = arith.mulf %60, %102 : vector<2x256xf32>
    %104 = arith.addf %100, %103 : vector<2x256xf32>
    %c2_30 = arith.constant 2 : index
    %c3_31 = arith.constant 3 : index
    %105 = memref.load %arg3[%c2_30, %c3_31] : memref<8x4xf32, #tpu.memory_space<smem>>
    %106 = vector.broadcast %105 : f32 to vector<2x256xf32>
    %107 = arith.mulf %61, %106 : vector<2x256xf32>
    %108 = arith.addf %104, %107 : vector<2x256xf32>
    %c4 = arith.constant 4 : index
    %c0_32 = arith.constant 0 : index
    %109 = vector.load %arg4[%c4, %c0_32] : memref<16x256xf32, #tpu.memory_space<vmem>>, vector<2x256xf32>
    tpu.vector_store %arg4[%c4, %c0_32], %108 {strides = array<i32>} : memref<16x256xf32, #tpu.memory_space<vmem>>, vector<2x256xf32>,
    %c3_33 = arith.constant 3 : index
    %c0_34 = arith.constant 0 : index
    %110 = memref.load %arg3[%c3_33, %c0_34] : memref<8x4xf32, #tpu.memory_space<smem>>
    %111 = vector.broadcast %110 : f32 to vector<2x256xf32>
    %112 = arith.mulf %58, %111 : vector<2x256xf32>
    %c3_35 = arith.constant 3 : index
    %c1_36 = arith.constant 1 : index
    %113 = memref.load %arg3[%c3_35, %c1_36] : memref<8x4xf32, #tpu.memory_space<smem>>
    %114 = vector.broadcast %113 : f32 to vector<2x256xf32>
    %115 = arith.mulf %59, %114 : vector<2x256xf32>
    %116 = arith.addf %112, %115 : vector<2x256xf32>
    %c3_37 = arith.constant 3 : index
    %c2_38 = arith.constant 2 : index
    %117 = memref.load %arg3[%c3_37, %c2_38] : memref<8x4xf32, #tpu.memory_space<smem>>
    %118 = vector.broadcast %117 : f32 to vector<2x256xf32>
    %119 = arith.mulf %60, %118 : vector<2x256xf32>
    %120 = arith.addf %116, %119 : vector<2x256xf32>
    %c3_39 = arith.constant 3 : index
    %c3_40 = arith.constant 3 : index
    %121 = memref.load %arg3[%c3_39, %c3_40] : memref<8x4xf32, #tpu.memory_space<smem>>
    %122 = vector.broadcast %121 : f32 to vector<2x256xf32>
    %123 = arith.mulf %61, %122 : vector<2x256xf32>
    %124 = arith.addf %120, %123 : vector<2x256xf32>
    %c6 = arith.constant 6 : index
    %c0_41 = arith.constant 0 : index
    %125 = vector.load %arg4[%c6, %c0_41] : memref<16x256xf32, #tpu.memory_space<vmem>>, vector<2x256xf32>
    tpu.vector_store %arg4[%c6, %c0_41], %124 {strides = array<i32>} : memref<16x256xf32, #tpu.memory_space<vmem>>, vector<2x256xf32>,
    %c4_42 = arith.constant 4 : index
    %c0_43 = arith.constant 0 : index
    %126 = memref.load %arg3[%c4_42, %c0_43] : memref<8x4xf32, #tpu.memory_space<smem>>
    %127 = vector.broadcast %126 : f32 to vector<2x256xf32>
    %128 = arith.mulf %58, %127 : vector<2x256xf32>
    %c4_44 = arith.constant 4 : index
    %c1_45 = arith.constant 1 : index
    %129 = memref.load %arg3[%c4_44, %c1_45] : memref<8x4xf32, #tpu.memory_space<smem>>
    %130 = vector.broadcast %129 : f32 to vector<2x256xf32>
    %131 = arith.mulf %59, %130 : vector<2x256xf32>
    %132 = arith.addf %128, %131 : vector<2x256xf32>
    %c4_46 = arith.constant 4 : index
    %c2_47 = arith.constant 2 : index
    %133 = memref.load %arg3[%c4_46, %c2_47] : memref<8x4xf32, #tpu.memory_space<smem>>
    %134 = vector.broadcast %133 : f32 to vector<2x256xf32>
    %135 = arith.mulf %60, %134 : vector<2x256xf32>
    %136 = arith.addf %132, %135 : vector<2x256xf32>
    %c4_48 = arith.constant 4 : index
    %c3_49 = arith.constant 3 : index
    %137 = memref.load %arg3[%c4_48, %c3_49] : memref<8x4xf32, #tpu.memory_space<smem>>
    %138 = vector.broadcast %137 : f32 to vector<2x256xf32>
    %139 = arith.mulf %61, %138 : vector<2x256xf32>
    %140 = arith.addf %136, %139 : vector<2x256xf32>
    %c8 = arith.constant 8 : index
    %c0_50 = arith.constant 0 : index
    %141 = vector.load %arg4[%c8, %c0_50] : memref<16x256xf32, #tpu.memory_space<vmem>>, vector<2x256xf32>
    tpu.vector_store %arg4[%c8, %c0_50], %140 {strides = array<i32>} : memref<16x256xf32, #tpu.memory_space<vmem>>, vector<2x256xf32>,
    %c5 = arith.constant 5 : index
    %c0_51 = arith.constant 0 : index
    %142 = memref.load %arg3[%c5, %c0_51] : memref<8x4xf32, #tpu.memory_space<smem>>
    %143 = vector.broadcast %142 : f32 to vector<2x256xf32>
    %144 = arith.mulf %58, %143 : vector<2x256xf32>
    %c5_52 = arith.constant 5 : index
    %c1_53 = arith.constant 1 : index
    %145 = memref.load %arg3[%c5_52, %c1_53] : memref<8x4xf32, #tpu.memory_space<smem>>
    %146 = vector.broadcast %145 : f32 to vector<2x256xf32>
    %147 = arith.mulf %59, %146 : vector<2x256xf32>
    %148 = arith.addf %144, %147 : vector<2x256xf32>
    %c5_54 = arith.constant 5 : index
    %c2_55 = arith.constant 2 : index
    %149 = memref.load %arg3[%c5_54, %c2_55] : memref<8x4xf32, #tpu.memory_space<smem>>
    %150 = vector.broadcast %149 : f32 to vector<2x256xf32>
    %151 = arith.mulf %60, %150 : vector<2x256xf32>
    %152 = arith.addf %148, %151 : vector<2x256xf32>
    %c5_56 = arith.constant 5 : index
    %c3_57 = arith.constant 3 : index
    %153 = memref.load %arg3[%c5_56, %c3_57] : memref<8x4xf32, #tpu.memory_space<smem>>
    %154 = vector.broadcast %153 : f32 to vector<2x256xf32>
    %155 = arith.mulf %61, %154 : vector<2x256xf32>
    %156 = arith.addf %152, %155 : vector<2x256xf32>
    %c10 = arith.constant 10 : index
    %c0_58 = arith.constant 0 : index
    %157 = vector.load %arg4[%c10, %c0_58] : memref<16x256xf32, #tpu.memory_space<vmem>>, vector<2x256xf32>
    tpu.vector_store %arg4[%c10, %c0_58], %156 {strides = array<i32>} : memref<16x256xf32, #tpu.memory_space<vmem>>, vector<2x256xf32>,
    %c6_59 = arith.constant 6 : index
    %c0_60 = arith.constant 0 : index
    %158 = memref.load %arg3[%c6_59, %c0_60] : memref<8x4xf32, #tpu.memory_space<smem>>
    %159 = vector.broadcast %158 : f32 to vector<2x256xf32>
    %160 = arith.mulf %58, %159 : vector<2x256xf32>
    %c6_61 = arith.constant 6 : index
    %c1_62 = arith.constant 1 : index
    %161 = memref.load %arg3[%c6_61, %c1_62] : memref<8x4xf32, #tpu.memory_space<smem>>
    %162 = vector.broadcast %161 : f32 to vector<2x256xf32>
    %163 = arith.mulf %59, %162 : vector<2x256xf32>
    %164 = arith.addf %160, %163 : vector<2x256xf32>
    %c6_63 = arith.constant 6 : index
    %c2_64 = arith.constant 2 : index
    %165 = memref.load %arg3[%c6_63, %c2_64] : memref<8x4xf32, #tpu.memory_space<smem>>
    %166 = vector.broadcast %165 : f32 to vector<2x256xf32>
    %167 = arith.mulf %60, %166 : vector<2x256xf32>
    %168 = arith.addf %164, %167 : vector<2x256xf32>
    %c6_65 = arith.constant 6 : index
    %c3_66 = arith.constant 3 : index
    %169 = memref.load %arg3[%c6_65, %c3_66] : memref<8x4xf32, #tpu.memory_space<smem>>
    %170 = vector.broadcast %169 : f32 to vector<2x256xf32>
    %171 = arith.mulf %61, %170 : vector<2x256xf32>
    %172 = arith.addf %168, %171 : vector<2x256xf32>
    %c12 = arith.constant 12 : index
    %c0_67 = arith.constant 0 : index
    %173 = vector.load %arg4[%c12, %c0_67] : memref<16x256xf32, #tpu.memory_space<vmem>>, vector<2x256xf32>
    tpu.vector_store %arg4[%c12, %c0_67], %172 {strides = array<i32>} : memref<16x256xf32, #tpu.memory_space<vmem>>, vector<2x256xf32>,
    %c7 = arith.constant 7 : index
    %c0_68 = arith.constant 0 : index
    %174 = memref.load %arg3[%c7, %c0_68] : memref<8x4xf32, #tpu.memory_space<smem>>
    %175 = vector.broadcast %174 : f32 to vector<2x256xf32>
    %176 = arith.mulf %58, %175 : vector<2x256xf32>
    %c7_69 = arith.constant 7 : index
    %c1_70 = arith.constant 1 : index
    %177 = memref.load %arg3[%c7_69, %c1_70] : memref<8x4xf32, #tpu.memory_space<smem>>
    %178 = vector.broadcast %177 : f32 to vector<2x256xf32>
    %179 = arith.mulf %59, %178 : vector<2x256xf32>
    %180 = arith.addf %176, %179 : vector<2x256xf32>
    %c7_71 = arith.constant 7 : index
    %c2_72 = arith.constant 2 : index
    %181 = memref.load %arg3[%c7_71, %c2_72] : memref<8x4xf32, #tpu.memory_space<smem>>
    %182 = vector.broadcast %181 : f32 to vector<2x256xf32>
    %183 = arith.mulf %60, %182 : vector<2x256xf32>
    %184 = arith.addf %180, %183 : vector<2x256xf32>
    %c7_73 = arith.constant 7 : index
    %c3_74 = arith.constant 3 : index
    %185 = memref.load %arg3[%c7_73, %c3_74] : memref<8x4xf32, #tpu.memory_space<smem>>
    %186 = vector.broadcast %185 : f32 to vector<2x256xf32>
    %187 = arith.mulf %61, %186 : vector<2x256xf32>
    %188 = arith.addf %184, %187 : vector<2x256xf32>
    %c14 = arith.constant 14 : index
    %c0_75 = arith.constant 0 : index
    %189 = vector.load %arg4[%c14, %c0_75] : memref<16x256xf32, #tpu.memory_space<vmem>>, vector<2x256xf32>
    tpu.vector_store %arg4[%c14, %c0_75], %188 {strides = array<i32>} : memref<16x256xf32, #tpu.memory_space<vmem>>, vector<2x256xf32>,
    return
  }
}

</mosaic_0001>

<bundles_post_ra>
// kernel: tpu_custom_call.1
= control target key start
LH: loop header
LB: loop body
LE: loop exit
PB: predicated region body
PF: predicated region fallthrough
CT: control target
= control target key end

     0   :  { %9 = vsyncpa [#allocation3], 0  ;;  %s1188_s0 = inlined_call_operand.vmem [shape: f32[8,256], index: 0, kind: input, shape index: {}]   ;;  %s1189_s1 = inlined_call_operand.hbm [shape: f32[8,9], index: 1, kind: input, shape index: {}]   ;;  %s1190_s2 = inlined_call_operand.vmem [shape: f32[8,1], index: 2, kind: input, shape index: {}]   ;;  %s1191_s3 = inlined_call_operand.vmem [shape: f32[8,4], index: 3, kind: input, shape index: {}]   ;;  %s1192_s4 = inlined_call_operand.hbm [shape: f32[16,256], index: 4, kind: output, shape index: {}]  }
   0x1   :  { %10 = vsyncpa [#allocation5], 0 }
   0x2   :  { %11 = vsyncpa [#allocation4], 0  ;;  %s19_s17 = sshll.u32 %s1189_s1, 4  ;;  %s730_s18 = smov [#allocation2]   ;;  %s20_s17 = int_to_ptr.hbm [resolvable:$true] %s19_s17 }
   0x3   :  { %s21_s19 = sshll.u32 %s730_s18, 4  ;;  %s32_s22 = sshll.u32 %s1191_s3, 4  ;;  %s22_s19 = int_to_ptr.vmem [resolvable:$true] %s21_s19  ;;  %s33_s22 = int_to_ptr.vmem [resolvable:$true] %s32_s22 }
   0x4   :  { %24 = dma.hbm_to_vmem [thread:$0]  %s20_s17, 128, %s22_s19, [#allocation3]  }
   0x5   :  { %s731_s23 = smov [#allocation6]  }
   0x6   :  { %35 = dma.vmem_to_smem %s33_s22, 128, %s731_s23, [#allocation5]  }
   0x7   :  { %724 = dma.done.wait [#allocation3], 128  }
   0x8   :  { %725 = vsyncadd [#allocation3], 4294967168 }
   0x9   :  { %726 = dma.done.wait [#allocation5], 128  }
   0xa   :  { %727 = vsyncadd [#allocation5], 4294967168 }
   0xb   :  { %44 = sfence }
   0xc   :  { %v782_v0 = vld [vmem:[%s1188_s0] sm:$0xff]  ;;  %s732_s1 = smov 126   ;;  %s733_s26 = smov 127   ;;  %v734_v2 = vmov 3   ;;  %v735_v3 = vmov 6   ;;  %v736_v4 = vmov 5   ;;  %v53_v12 = vlaneseq }
   0xd   :  { %58 = vrot.lane.b32.xlu1 %v782_v0, %s732_s1  ;;  %49 = vrot.lane.b32.xlu0 %v782_v0, %s733_s26  ;;  %v786_v1 = vld [vmem:[#allocation2] sm:$0xff]  ;;  %v792_v5 = vld [vmem:[%s1188_s0 + $0x8] sm:$0xff]  ;;  %v737_v6 = vmov 4   ;;  %v738_v7 = vmov 7   ;;  %v739_v8 = vmov 8   ;;  %v740_v9 = vmov 1  }
   0xe   :  { %650 = vset.pattern.permute.xlu2 %v734_v2  ;;  %653 = vset.pattern.permute.xlu1 %v735_v3  ;;  %v741_v10 = vmov 0   ;;  %v742_v11 = vmov 2   ;;  %v802_v15 = vand.u32 127, %v53_v12  ;;  %v151_v21 = vmul.f32 %v792_v5, %v792_v5  ;;  %s743_s0 = smov 112   ;;  %s744_s28 = smov 96   ;;  %v48_v58 = vld [vmem:[%s1190_s2] sm:$0xff] }
   0xf   :  { %652 = vset.pattern.permute.xlu0 %v736_v4  ;;  %89 = vperm.xlu2 %650, %v786_v1   ;;  %v150_v22 = vmul.f32 %v782_v0, %v782_v0  ;;  %s853_s5 = sld [smem:[#allocation6]] }
  0x10   :  { %vm55_vm0 = vcmp.lt.s32.totalorder %v802_v15, 127  ;;  %vm62_vm1 = vcmp.lt.s32.totalorder %v802_v15, 126  ;;  %vm114_vm2 = vcmp.lt.s32.totalorder %v802_v15, 112  ;;  %s856_s6 = sld [smem:[#allocation6 + $0x1]]  ;;  %vm145_vm3 = vcmp.lt.s32.totalorder %v802_v15, 96 }
  0x11   :  { %s858_s7 = sld [smem:[#allocation6 + $0x2]] }
  0x12   :  { %s861_s8 = sld [smem:[#allocation6 + $0x3]] }
  0x13   :  { %s867_s2 = sld [smem:[#allocation6 + $0x80]] }
  0x14   :  { %s869_s9 = sld [smem:[#allocation6 + $0x81]] }
  0x15   :  { %60 = vrot.lane.b32.xlu1 %v792_v5, %s732_s1  ;;  %51 = vrot.lane.b32.xlu0 %v792_v5, %s733_s26  ;;  %s875_s10 = sld [smem:[#allocation6 + $0x82]] }
  0x16   :  { %s877_s11 = sld [smem:[#allocation6 + $0x83]] }
  0x17   :  { %651 = vset.pattern.permute.xlu2 %v737_v6  ;;  %s879_s12 = sld [smem:[#allocation6 + $0x100]] }
  0x18   :  { %95 = vperm.xlu2 %651, %v786_v1   ;;  %s885_s13 = sld [smem:[#allocation6 + $0x101]] }
  0x19   :  { %s887_s14 = sld [smem:[#allocation6 + $0x102]] }
  0x1a   :  { %s890_s15 = sld [smem:[#allocation6 + $0x103]] }
  0x1b   :  { %s893_s16 = sld [smem:[#allocation6 + $0x180]] }
  0x1c   :  { %s895_s17 = sld [smem:[#allocation6 + $0x181]] }
  0x1d   :  { %120 = vperm.xlu1 %653, %v786_v1   ;;  %103 = vperm.xlu0 %652, %v786_v1   ;;  %s897_s18 = sld [smem:[#allocation6 + $0x182]] }
  0x1e   :  { %s899_s19 = sld [smem:[#allocation6 + $0x183]] }
  0x1f   :  { %s901_s20 = sld [smem:[#allocation6 + $0x200]] }
  0x20   :  { %654 = vset.pattern.permute.xlu2 %v738_v7  ;;  %s906_s21 = sld [smem:[#allocation6 + $0x201]] }
  0x21   :  { %126 = vperm.xlu2 %654, %v786_v1   ;;  %s915_s22 = sld [smem:[#allocation6 + $0x202]] }
  0x22   :  { %s919_s23 = sld [smem:[#allocation6 + $0x203]] }
  0x23   :  { %s923_s24 = sld [smem:[#allocation6 + $0x280]] }
  0x24   :  { %s929_s25 = sld [smem:[#allocation6 + $0x281]] }
  0x25   :  { %655 = vset.pattern.permute.xlu1 %v739_v8  ;;  %656 = vset.pattern.permute.xlu0 %v741_v10  ;;  %s932_s1 = sld [smem:[#allocation6 + $0x282]] }
  0x26   :  { %134 = vperm.xlu1 %655, %v786_v1   ;;  %s937_s26 = sld [smem:[#allocation6 + $0x283]] }
  0x27   :  { %s943_s3 = sld [smem:[#allocation6 + $0x300]] }
  0x28   :  { %s949_s27 = sld [smem:[#allocation6 + $0x301]] }
  0x29   :  { %658 = vset.pattern.permute.xlu2 %v742_v11  ;;  %s1111_s29 = sld [smem:[#allocation6 + $0x380]] }
  0x2a   :  { %s1143_s30 = sld [smem:[#allocation6 + $0x381]] }
  0x2e   :  { %657 = vset.pattern.permute.xlu1 %v740_v9 }
  0x69   :  { %v90_v16 = vpop.permute.xlu2 %89 }
  0x6a   :  { %v92_v39 = vmul.f32 %v90_v16, %v782_v0  ;;  %v93_v48 = vmul.f32 %v90_v16, %v792_v5 }
  0x72   :  { %v96_v31 = vpop.permute.xlu2 %95 }
  0x7b   :  { %v127_v35 = vpop.permute.xlu2 %126 }
  0x7f   :  { %v59_v13 = vpop.permute.xlu1 %58  ;;  %v50_v14 = vpop.permute.xlu0 %49 }
  0x87   :  { %v61_v17 = vpop.permute.xlu1 %60  ;;  %v52_v18 = vpop.permute.xlu0 %51 }
  0x88   :  { %v806_v19 = vsel %vm55_vm0, %v50_v14, %v52_v18  ;;  %v808_v20 = vsel %vm55_vm0, %v52_v18, %v50_v14  ;;  %v814_v23 = vsel %vm62_vm1, %v59_v13, %v61_v17  ;;  %v816_v24 = vsel %vm62_vm1, %v61_v17, %v59_v13 }
  0x89   :  { %v152_v25 = vmul.f32 %v806_v19, %v806_v19  ;;  %v153_v26 = vmul.f32 %v808_v20, %v808_v20  ;;  %v156_v27 = vmul.f32 %v814_v23, %v814_v23  ;;  %v157_v28 = vmul.f32 %v816_v24, %v816_v24 }
  0x8a   :  { %v98_v40 = vmul.f32 %v96_v31, %v806_v19  ;;  %v129_v41 = vmul.f32 %v127_v35, %v806_v19  ;;  %v99_v49 = vmul.f32 %v96_v31, %v808_v20  ;;  %v130_v51 = vmul.f32 %v127_v35, %v808_v20 }
  0x8b   :  { %v155_v29 = vadd.f32 %v153_v26, %v151_v21  ;;  %v154_v30 = vadd.f32 %v152_v25, %v150_v22  ;;  %v238_v35 = vstv %s861_s8 }
  0x8c   :  { %v100_v45 = vadd.f32 %v98_v40, %v92_v39  ;;  %v101_v55 = vadd.f32 %v99_v49, %v93_v48  ;;  %v280_v39 = vstv %s877_s11  ;;  %v300_v40 = vstv %s879_s12  ;;  %s746_s11 = smov 256   ;;  %s747_s12 = smov 16  }
  0x8d   :  { %v159_v32 = vadd.f32 %v157_v28, %v155_v29  ;;  %v158_v33 = vadd.f32 %v156_v27, %v154_v30  ;;  %v210_v29 = vstv %s853_s5  ;;  %v214_v30 = vstv %s856_s6  ;;  %s1145_s5 = sld [smem:[#allocation6 + $0x382]] }
  0x8e   :  { %s1151_s6 = sld [smem:[#allocation6 + $0x383]] }
  0x8f   :  { %v121_v34 = vpop.permute.xlu1 %120  ;;  %162 = vrot.lane.b32.xlu0 %v159_v32, %s743_s0  ;;  %168 = vrot.lane.b32.xlu1 %v158_v33, %s744_s28  ;;  %v104_v37 = vpop.permute.xlu0 %103 }
  0x90   :  { %160 = vrot.lane.b32.xlu2 %v158_v33, %s743_s0  ;;  %v123_v36 = vmul.f32 %v121_v34, %v782_v0  ;;  %v106_v43 = vmul.f32 %v104_v37, %v814_v23  ;;  %v124_v50 = vmul.f32 %v121_v34, %v792_v5  ;;  %v107_v52 = vmul.f32 %v104_v37, %v816_v24 }
  0x91   :  { %v256_v37 = vstv %s869_s9 }
  0x92   :  { %v131_v44 = vadd.f32 %v129_v41, %v123_v36  ;;  %v108_v47 = vadd.f32 %v106_v43, %v100_v45  ;;  %v132_v54 = vadd.f32 %v130_v51, %v124_v50  ;;  %v109_v56 = vadd.f32 %v107_v52, %v101_v55 }
  0x93   :  { %v252_v36 = vstv %s867_s2  ;;  %v316_v50 = vstv %s887_s14  ;;  %v328_v51 = vstv %s890_s15 }
  0x97   :  { %67 = vperm.xlu0 %656, %v786_v1   ;;  %73 = vperm.xlu1 %657, %v786_v1  }
  0x98   :  { %v135_v38 = vpop.permute.xlu1 %134  ;;  %170 = vrot.lane.b32.xlu2 %v159_v32, %s744_s28 }
  0x99   :  { %v137_v42 = vmul.f32 %v135_v38, %v814_v23  ;;  %v138_v53 = vmul.f32 %v135_v38, %v816_v24  ;;  %v268_v38 = vstv %s875_s10  ;;  %s587_s10 = sshll.u32 %s1192_s4, 4  ;;  %s588_s10 = int_to_ptr.hbm [resolvable:$true] %s587_s10 }
  0x9b   :  { %v139_v46 = vadd.f32 %v137_v42, %v131_v44  ;;  %v140_v57 = vadd.f32 %v138_v53, %v132_v54 }
  0x9f   :  { %141 = vrot.lane.b32.xlu0 %v139_v46, %s744_s28  ;;  %110 = vrot.lane.b32.xlu1 %v108_v47, %s743_s0  ;;  %v304_v47 = vstv %s885_s13 }
  0xa0   :  { %81 = vperm.xlu2 %658, %v786_v1  }
  0xa7   :  { %143 = vrot.lane.b32.xlu1 %v140_v57, %s744_s28  ;;  %s959_s28 = sld [smem:[#allocation6 + $0x303]] }
  0xa8   :  { %112 = vrot.lane.b32.xlu2 %v109_v56, %s743_s0  ;;  %s953_s0 = sld [smem:[#allocation6 + $0x302]] }
  0xa9   :  { %659 = vset.pattern.permute.xlu2 %v741_v10 }
  0xb0   :  { %200 = vperm.xlu2 %659, %v48_v58  }
  0xea   :  { %v161_v59 = vpop.permute.xlu2 %160 }
  0xf2   :  { %v171_v60 = vpop.permute.xlu2 %170 }
  0xfa   :  { %v82_v62 = vpop.permute.xlu2 %81 }
  0xfb   :  { %v84_v27 = vmul.f32 %v82_v62, %v814_v23 }
 0x101   :  { %v163_v61 = vpop.permute.xlu0 %162  ;;  %v169_v2 = vpop.permute.xlu1 %168 }
 0x102   :  { %v164_v63 = vsel %vm114_vm2, %v161_v59, %v163_v61  ;;  %v165_v1 = vsel %vm114_vm2, %v163_v61, %v161_v59  ;;  %v172_v6 = vsel %vm145_vm3, %v169_v2, %v171_v60  ;;  %v173_v7 = vsel %vm145_vm3, %v171_v60, %v169_v2  ;;  %v113_v13 = vpop.permute.xlu2 %112 }
 0x103   :  { %v166_v3 = vadd.f32 %v164_v63, %v158_v33  ;;  %v167_v4 = vadd.f32 %v165_v1, %v159_v32  ;;  %v226_v33 = vstv %s858_s7  ;;  %v352_v63 = vstv %s895_s17  ;;  %s745_s7 = smov [#allocation7]  }
 0x104   :  { %v364_v1 = vstv %s897_s18  ;;  %v376_v2 = vstv %s899_s19  ;;  %s585_s8 = sshll.u32 %s745_s7, 4  ;;  %s586_s8 = int_to_ptr.vmem [resolvable:$true] %s585_s8 }
 0x105   :  { %v174_v8 = vadd.f32 %v172_v6, %v166_v3  ;;  %v175_v9 = vadd.f32 %v173_v7, %v167_v4  ;;  %v396_v3 = vstv %s901_s20  ;;  %v400_v4 = vstv %s906_s21 }
 0x106   :  { %v412_v7 = vstv %s915_s22 }
 0x107   :  { %v881_v10 = vadd.f32 1e-08, %v174_v8  ;;  %v883_v11 = vadd.f32 1e-08, %v175_v9  ;;  %v424_v8 = vstv %s919_s23 }
 0x109   :  { %660 = vrsqrt.f32 %v881_v10  ;;  %v74_v12 = vpop.permute.xlu1 %73  ;;  %v68_v14 = vpop.permute.xlu0 %67  ;;  %vm184_vm4 = vweird.f32 %v881_v10  ;;  %vm194_vm5 = vweird.f32 %v883_v11 }
 0x10a   :  { %662 = vrsqrt.f32 %v883_v11  ;;  %v70_v17 = vmul.f32 %v68_v14, %v782_v0  ;;  %v71_v22 = vmul.f32 %v68_v14, %v792_v5  ;;  %v76_v25 = vmul.f32 %v74_v12, %v806_v19 }
 0x10b   :  { %v77_v26 = vmul.f32 %v74_v12, %v808_v20  ;;  %v85_v19 = vmul.f32 %v82_v62, %v816_v24  ;;  %v201_v24 = vpop.permute.xlu2 %200  ;;  %v348_v62 = vstv %s893_s16  ;;  %v438_v12 = vstv %s923_s24 }
 0x10c   :  { %v78_v23 = vadd.f32 %v76_v25, %v70_v17  ;;  %v203_v48 = vmul.f32 %v201_v24, %v881_v10  ;;  %v204_v49 = vmul.f32 %v201_v24, %v883_v11  ;;  %v454_v17 = vstv %s932_s1 }
 0x10d   :  { %v79_v32 = vadd.f32 %v77_v26, %v71_v22  ;;  %v486_v22 = vstv %s943_s3  ;;  %v490_v25 = vstv %s949_s27  ;;  %v502_v26 = vstv %s953_s0 }
 0x10e   :  { %v86_v45 = vadd.f32 %v84_v27, %v78_v23 }
 0x10f   :  { %v903_v16 = vpop.eup %660  ;;  %v87_v46 = vadd.f32 %v85_v19, %v79_v32 }
 0x110   :  { %v908_v18 = vpop.eup %662  ;;  %v179_v21 = vmul.f32 %v903_v16, %v881_v10  ;;  %vm185_vm6 = vweird.f32 %v903_v16 }
 0x111   :  { %v189_v0 = vmul.f32 %v908_v18, %v883_v11  ;;  %v111_v5 = vpop.permute.xlu1 %110  ;;  %vm195_vm7 = vweird.f32 %v908_v18  ;;  %v142_v52 = vpop.permute.xlu0 %141  ;;  %vm186_vm8 = vmor %vm184_vm4, %vm185_vm6  ;;  %v442_v11 = vstv %s929_s25 }
 0x112   :  { %v180_v28 = vmul.f32 %v903_v16, %v179_v21  ;;  %v115_v43 = vsel %vm114_vm2, %v111_v5, %v113_v13  ;;  %v116_v44 = vsel %vm114_vm2, %v113_v13, %v111_v5  ;;  %vm196_vm9 = vmor %vm194_vm5, %vm195_vm7  ;;  %v466_v21 = vstv %s937_s26 }
 0x113   :  { %v190_v20 = vmul.f32 %v908_v18, %v189_v0  ;;  %v117_v53 = vadd.f32 %v115_v43, %v86_v45  ;;  %v118_v54 = vadd.f32 %v116_v44, %v87_v46 }
 0x114   :  { %v181_v31 = vmul.f32 0.5, %v180_v28 }
 0x115   :  { %v191_v34 = vmul.f32 0.5, %v190_v20 }
 0x116   :  { %v182_v41 = vsub.f32 1.5, %v181_v31 }
 0x117   :  { %v192_v42 = vsub.f32 1.5, %v191_v34 }
 0x118   :  { %v183_v56 = vmul.f32 %v903_v16, %v182_v41 }
 0x119   :  { %v144_v55 = vpop.permute.xlu1 %143  ;;  %v193_v57 = vmul.f32 %v908_v18, %v192_v42 }
 0x11a   :  { %v146_v58 = vsel %vm145_vm3, %v142_v52, %v144_v55  ;;  %v147_v59 = vsel %vm145_vm3, %v144_v55, %v142_v52  ;;  %v187_v9 = vsel %vm186_vm8, %v903_v16, %v183_v56  ;;  %v514_v16 = vstv %s959_s28 }
 0x11b   :  { %v148_v60 = vadd.f32 %v146_v58, %v117_v53  ;;  %v149_v61 = vadd.f32 %v147_v59, %v118_v54  ;;  %v197_v10 = vsel %vm196_vm9, %v908_v18, %v193_v57 }
 0x11d   :  { %v205_v15 = vadd.f32 %v203_v48, %v148_v60  ;;  %v206_v6 = vadd.f32 %v204_v49, %v149_v61 }
 0x11f   :  { %v987_v13 = vmul.f32 %v205_v15, %v187_v9  ;;  %v989_v14 = vmul.f32 %v206_v6, %v197_v10 }
 0x121   :  { %v211_v18 = vmul.f32 %v210_v29, %v987_v13  ;;  %v212_v0 = vmul.f32 %v210_v29, %v989_v14  ;;  %v215_v27 = vmul.f32 %v214_v30, %v987_v13  ;;  %v216_v28 = vmul.f32 %v214_v30, %v989_v14 }
 0x122   :  { %v227_v5 = vmul.f32 %v226_v33, %v987_v13  ;;  %v228_v19 = vmul.f32 %v226_v33, %v989_v14  ;;  %v239_v20 = vmul.f32 %v238_v35, %v987_v13  ;;  %v240_v29 = vmul.f32 %v238_v35, %v989_v14 }
 0x123   :  { %v219_v31 = vrot.slane %v215_v27, 2  ;;  %v220_v23 = vrot.slane %v216_v28, 2  ;;  %v253_v30 = vmul.f32 %v252_v36, %v987_v13  ;;  %v254_v32 = vmul.f32 %v252_v36, %v989_v14 }
 0x124   :  { %v231_v34 = vrot.slane %v227_v5, 4  ;;  %v232_v24 = vrot.slane %v228_v19, 4  ;;  %v243_v33 = vrot.slane %v239_v20, 6  ;;  %v244_v41 = vrot.slane %v240_v29, 6 }
 0x125   :  { %v223_v42 = vadd.f32 %v219_v31, %v211_v18  ;;  %v224_v43 = vadd.f32 %v220_v23, %v212_v0  ;;  %v257_v44 = vmul.f32 %v256_v37, %v987_v13  ;;  %v258_v35 = vmul.f32 %v256_v37, %v989_v14 }
 0x126   :  { %v269_v45 = vmul.f32 %v268_v38, %v987_v13  ;;  %v270_v46 = vmul.f32 %v268_v38, %v989_v14  ;;  %v281_v36 = vmul.f32 %v280_v39, %v987_v13  ;;  %v282_v48 = vmul.f32 %v280_v39, %v989_v14 }
 0x127   :  { %v235_v49 = vadd.f32 %v231_v34, %v223_v42  ;;  %v236_v52 = vadd.f32 %v232_v24, %v224_v43  ;;  %v261_v53 = vrot.slane %v257_v44, 2  ;;  %v262_v37 = vrot.slane %v258_v35, 2 }
 0x128   :  { %v273_v54 = vrot.slane %v269_v45, 4  ;;  %v274_v55 = vrot.slane %v270_v46, 4  ;;  %v285_v56 = vrot.slane %v281_v36, 6  ;;  %v286_v57 = vrot.slane %v282_v48, 6 }
 0x129   :  { %v247_v38 = vadd.f32 %v243_v33, %v235_v49  ;;  %v248_v58 = vadd.f32 %v244_v41, %v236_v52  ;;  %v265_v59 = vadd.f32 %v261_v53, %v253_v30  ;;  %v266_v60 = vadd.f32 %v262_v37, %v254_v32 }
 0x12a   :  { %v301_v39 = vmul.f32 %v300_v40, %v987_v13  ;;  %v302_v61 = vmul.f32 %v300_v40, %v989_v14  ;;  %v305_v15 = vmul.f32 %v304_v47, %v987_v13  ;;  %v306_v6 = vmul.f32 %v304_v47, %v989_v14 }
 0x12b   :  { %249 = vst [vmem:[#allocation7] sm:$0x3] %v247_v38  ;;  %v277_v9 = vadd.f32 %v273_v54, %v265_v59  ;;  %v278_v10 = vadd.f32 %v274_v55, %v266_v60  ;;  %v317_v18 = vmul.f32 %v316_v50, %v987_v13  ;;  %v318_v0 = vmul.f32 %v316_v50, %v989_v14 }
 0x12c   :  { %250 = vst [vmem:[#allocation7 + $0x8] sm:$0x3] %v248_v58  ;;  %v309_v27 = vrot.slane %v305_v15, 2  ;;  %v310_v40 = vrot.slane %v306_v6, 2  ;;  %v329_v28 = vmul.f32 %v328_v51, %v987_v13  ;;  %v330_v47 = vmul.f32 %v328_v51, %v989_v14 }
 0x12d   :  { %v289_v5 = vadd.f32 %v285_v56, %v277_v9  ;;  %v290_v19 = vadd.f32 %v286_v57, %v278_v10  ;;  %v321_v20 = vrot.slane %v317_v18, 4  ;;  %v322_v29 = vrot.slane %v318_v0, 4 }
 0x12e   :  { %v313_v50 = vadd.f32 %v309_v27, %v301_v39  ;;  %v314_v31 = vadd.f32 %v310_v40, %v302_v61  ;;  %v333_v23 = vrot.slane %v329_v28, 6  ;;  %v334_v30 = vrot.slane %v330_v47, 6 }
 0x12f   :  { %v293_v32 = vrot.slane %v289_v5, 6  ;;  %v294_v34 = vrot.slane %v290_v19, 6  ;;  %v349_v24 = vmul.f32 %v348_v62, %v987_v13  ;;  %v350_v51 = vmul.f32 %v348_v62, %v989_v14 }
 0x130   :  { %v325_v33 = vadd.f32 %v321_v20, %v313_v50  ;;  %v326_v41 = vadd.f32 %v322_v29, %v314_v31  ;;  %v353_v42 = vmul.f32 %v352_v63, %v987_v13  ;;  %v354_v43 = vmul.f32 %v352_v63, %v989_v14 }
 0x131   :  { %297 = vst [vmem:[#allocation7] sm:$0xc] %v293_v32  ;;  %v365_v44 = vmul.f32 %v364_v1, %v987_v13  ;;  %v366_v35 = vmul.f32 %v364_v1, %v989_v14  ;;  %v377_v45 = vmul.f32 %v376_v2, %v987_v13  ;;  %v378_v62 = vmul.f32 %v376_v2, %v989_v14 }
 0x132   :  { %298 = vst [vmem:[#allocation7 + $0x8] sm:$0xc] %v294_v34  ;;  %v337_v46 = vadd.f32 %v333_v23, %v325_v33  ;;  %v338_v63 = vadd.f32 %v334_v30, %v326_v41  ;;  %v357_v36 = vrot.slane %v353_v42, 2  ;;  %v358_v48 = vrot.slane %v354_v43, 2 }
 0x133   :  { %v369_v49 = vrot.slane %v365_v44, 4  ;;  %v370_v52 = vrot.slane %v366_v35, 4  ;;  %v381_v1 = vrot.slane %v377_v45, 6  ;;  %v382_v53 = vrot.slane %v378_v62, 6 }
 0x134   :  { %v341_v37 = vrot.slane %v337_v46, 4  ;;  %v342_v54 = vrot.slane %v338_v63, 4  ;;  %v361_v55 = vadd.f32 %v357_v36, %v349_v24  ;;  %v362_v56 = vadd.f32 %v358_v48, %v350_v51 }
 0x135   :  { %v397_v2 = vmul.f32 %v396_v3, %v987_v13  ;;  %v398_v57 = vmul.f32 %v396_v3, %v989_v14  ;;  %v401_v38 = vmul.f32 %v400_v4, %v987_v13  ;;  %v402_v58 = vmul.f32 %v400_v4, %v989_v14 }
 0x136   :  { %345 = vst [vmem:[#allocation7] sm:$0x30] %v341_v37  ;;  %v373_v59 = vadd.f32 %v369_v49, %v361_v55  ;;  %v374_v60 = vadd.f32 %v370_v52, %v362_v56  ;;  %v413_v39 = vmul.f32 %v412_v7, %v987_v13  ;;  %v414_v61 = vmul.f32 %v412_v7, %v989_v14 }
 0x137   :  { %346 = vst [vmem:[#allocation7 + $0x8] sm:$0x30] %v342_v54  ;;  %v405_v3 = vrot.slane %v401_v38, 2  ;;  %v406_v15 = vrot.slane %v402_v58, 2  ;;  %v425_v6 = vmul.f32 %v424_v8, %v987_v13  ;;  %v426_v4 = vmul.f32 %v424_v8, %v989_v14 }
 0x138   :  { %v385_v9 = vadd.f32 %v381_v1, %v373_v59  ;;  %v386_v10 = vadd.f32 %v382_v53, %v374_v60  ;;  %v417_v18 = vrot.slane %v413_v39, 4  ;;  %v418_v7 = vrot.slane %v414_v61, 4 }
 0x139   :  { %v409_v0 = vadd.f32 %v405_v3, %v397_v2  ;;  %v410_v27 = vadd.f32 %v406_v15, %v398_v57  ;;  %v429_v40 = vrot.slane %v425_v6, 6  ;;  %v430_v28 = vrot.slane %v426_v4, 6 }
 0x13a   :  { %v389_v47 = vrot.slane %v385_v9, 2  ;;  %v390_v5 = vrot.slane %v386_v10, 2  ;;  %v439_v19 = vmul.f32 %v438_v12, %v987_v13  ;;  %v440_v8 = vmul.f32 %v438_v12, %v989_v14 }
 0x13b   :  { %v421_v20 = vadd.f32 %v417_v18, %v409_v0  ;;  %v422_v29 = vadd.f32 %v418_v7, %v410_v27  ;;  %v443_v50 = vmul.f32 %v442_v11, %v987_v13  ;;  %v444_v31 = vmul.f32 %v442_v11, %v989_v14 }
 0x13c   :  { %393 = vst [vmem:[#allocation7] sm:$0xc0] %v389_v47  ;;  %v455_v23 = vmul.f32 %v454_v17, %v987_v13  ;;  %v456_v30 = vmul.f32 %v454_v17, %v989_v14  ;;  %v467_v32 = vmul.f32 %v466_v21, %v987_v13  ;;  %v468_v12 = vmul.f32 %v466_v21, %v989_v14 }
 0x13d   :  { %394 = vst [vmem:[#allocation7 + $0x8] sm:$0xc0] %v390_v5  ;;  %v433_v34 = vadd.f32 %v429_v40, %v421_v20  ;;  %v434_v11 = vadd.f32 %v430_v28, %v422_v29  ;;  %v447_v24 = vrot.slane %v443_v50, 2  ;;  %v448_v51 = vrot.slane %v444_v31, 2 }
 0x13e   :  { %v459_v17 = vrot.slane %v455_v23, 4  ;;  %v460_v33 = vrot.slane %v456_v30, 4  ;;  %v471_v41 = vrot.slane %v467_v32, 6  ;;  %v534_v21 = vstv %s1111_s29 }
 0x13f   :  { %435 = vst [vmem:[#allocation7 + $0x10] sm:$0x3] %v433_v34  ;;  %v451_v42 = vadd.f32 %v447_v24, %v439_v19  ;;  %v452_v43 = vadd.f32 %v448_v51, %v440_v8  ;;  %v472_v44 = vrot.slane %v468_v12, 6  ;;  %v487_v35 = vmul.f32 %v486_v22, %v987_v13 }
 0x140   :  { %436 = vst [vmem:[#allocation7 + $0x18] sm:$0x3] %v434_v11  ;;  %v491_v45 = vmul.f32 %v490_v25, %v987_v13  ;;  %v492_v62 = vmul.f32 %v490_v25, %v989_v14  ;;  %v503_v46 = vmul.f32 %v502_v26, %v987_v13  ;;  %v504_v63 = vmul.f32 %v502_v26, %v989_v14 }
 0x141   :  { %v463_v36 = vadd.f32 %v459_v17, %v451_v42  ;;  %v464_v48 = vadd.f32 %v460_v33, %v452_v43  ;;  %v515_v49 = vmul.f32 %v514_v16, %v987_v13  ;;  %v516_v52 = vmul.f32 %v514_v16, %v989_v14 }
 0x142   :  { %v488_v1 = vmul.f32 %v486_v22, %v989_v14  ;;  %v495_v25 = vrot.slane %v491_v45, 2  ;;  %v496_v53 = vrot.slane %v492_v62, 2  ;;  %v507_v37 = vrot.slane %v503_v46, 4 }
 0x143   :  { %v475_v54 = vadd.f32 %v471_v41, %v463_v36  ;;  %v476_v55 = vadd.f32 %v472_v44, %v464_v48  ;;  %v508_v56 = vrot.slane %v504_v63, 4  ;;  %v519_v26 = vrot.slane %v515_v49, 6 }
 0x144   :  { %v499_v2 = vadd.f32 %v495_v25, %v487_v35  ;;  %v500_v57 = vadd.f32 %v496_v53, %v488_v1  ;;  %v520_v38 = vrot.slane %v516_v52, 6  ;;  %v535_v58 = vmul.f32 %v534_v21, %v987_v13 }
 0x145   :  { %v479_v59 = vrot.slane %v475_v54, 6  ;;  %v480_v60 = vrot.slane %v476_v55, 6  ;;  %v538_v16 = vstv %s1143_s30  ;;  %v550_v39 = vstv %s1145_s5 }
 0x146   :  { %v511_v61 = vadd.f32 %v507_v37, %v499_v2  ;;  %v512_v3 = vadd.f32 %v508_v56, %v500_v57  ;;  %v539_v22 = vmul.f32 %v538_v16, %v987_v13  ;;  %v540_v15 = vmul.f32 %v538_v16, %v989_v14 }
 0x147   :  { %483 = vst [vmem:[#allocation7 + $0x10] sm:$0xc] %v479_v59  ;;  %v536_v6 = vmul.f32 %v534_v21, %v989_v14  ;;  %v551_v4 = vmul.f32 %v550_v39, %v987_v13  ;;  %v552_v9 = vmul.f32 %v550_v39, %v989_v14  ;;  %v562_v10 = vstv %s1151_s6 }
 0x148   :  { %484 = vst [vmem:[#allocation7 + $0x18] sm:$0xc] %v480_v60  ;;  %v523_v18 = vadd.f32 %v519_v26, %v511_v61  ;;  %v524_v7 = vadd.f32 %v520_v38, %v512_v3  ;;  %v543_v0 = vrot.slane %v539_v22, 2  ;;  %v544_v27 = vrot.slane %v540_v15, 2 }
 0x149   :  { %v555_v40 = vrot.slane %v551_v4, 4  ;;  %v556_v28 = vrot.slane %v552_v9, 4  ;;  %v563_v47 = vmul.f32 %v562_v10, %v987_v13  ;;  %v564_v5 = vmul.f32 %v562_v10, %v989_v14 }
 0x14a   :  { %v527_v19 = vrot.slane %v523_v18, 4  ;;  %v528_v8 = vrot.slane %v524_v7, 4  ;;  %v547_v20 = vadd.f32 %v543_v0, %v535_v58  ;;  %v548_v29 = vadd.f32 %v544_v27, %v536_v6 }
 0x14b   :  { %v567_v23 = vrot.slane %v563_v47, 6  ;;  %v568_v30 = vrot.slane %v564_v5, 6 }
 0x14c   :  { %531 = vst [vmem:[#allocation7 + $0x10] sm:$0x30] %v527_v19  ;;  %v559_v50 = vadd.f32 %v555_v40, %v547_v20  ;;  %v560_v31 = vadd.f32 %v556_v28, %v548_v29 }
 0x14d   :  { %532 = vst [vmem:[#allocation7 + $0x18] sm:$0x30] %v528_v8 }
 0x14e   :  { %v571_v32 = vadd.f32 %v567_v23, %v559_v50  ;;  %v572_v13 = vadd.f32 %v568_v30, %v560_v31 }
 0x150   :  { %v575_v12 = vrot.slane %v571_v32, 2  ;;  %v576_v14 = vrot.slane %v572_v13, 2 }
 0x152   :  { %579 = vst [vmem:[#allocation7 + $0x10] sm:$0xc0] %v575_v12 }
 0x153   :  { %580 = vst [vmem:[#allocation7 + $0x18] sm:$0xc0] %v576_v14 }
 0x154   :  { %593 = dma.vmem_to_hbm [thread:$0]  %s586_s8, 512, %s588_s10, [#allocation4], %s746_s11, %s746_s11, %s747_s12  }
 0x155   :  { %728 = dma.done.wait [#allocation4], 512  }
 0x156   :  { %729 = vsyncadd [#allocation4], 4294966784 }
 0x157   :  { %598 = vsyncpa [#allocation3], 1 }
 0x158   :  { %599 = vsyncpa [#allocation4], 1 }
 0x159   :  { %600 = vsyncpa [#allocation5], 1 }

</bundles_post_ra>
